<compile_context>
chip_gen: v7x
topology: tpu7x:2x2x1
jax: 0.10.0
libtpu: 0.0.40
codegen_flags: <defaults>
</compile_context>

<pallas_src>
import functools

import jax
import jax.numpy as jnp
from jax.experimental import pallas as pl
from jax.experimental.pallas import tpu as pltpu


def _round_up(x, m):
    return ((x + m - 1) // m) * m


def _temporal_block_kernel(xcol_ref, w1_ref, b1_ref, w2_ref, b2_ref,
                           wds_ref, bds_ref, mask_ref, out_ref, h1g_ref,
                           *, K, dilation, pad):
    # xcol_ref : (K*Cin, Tp)    bf16  conv1 im2col slab; row block k = Xg shifted by k*dilation
    # w1_ref   : (Cout, K*Cin)  bf16  conv1 weights fused over taps
    # b1_ref   : (Cout, 1)      f32
    # w2_ref   : (K, Cout, Cout) bf16
    # b2_ref   : (Cout, 1)      f32
    # wds_ref  : (Cout, Cin)    bf16  1x1 downsample conv
    # bds_ref  : (Cout, 1)      f32
    # mask_ref : (1, Tp)        f32   1.0 at valid output columns, 0.0 at per-batch pad / tail junk
    # out_ref  : (Cout, Tp)     f32
    # h1g_ref  : (Cout, Tp+pad) bf16  VMEM scratch: causally re-padded h1 for conv2
    Cout, Tp = out_ref.shape
    Cin = wds_ref.shape[1]

    # ---- conv1: all K dilated taps fused into a single bf16 MXU matmul, f32 acc --
    c1 = jnp.dot(w1_ref[...], xcol_ref[...], preferred_element_type=jnp.float32)
    h1 = jnp.maximum(c1 + b1_ref[...], 0.0) * mask_ref[...]
    # dropout1: identity (inference / eval mode)

    # ---- causal re-pad of h1 into persistent VMEM scratch (no jnp.concatenate) ---
    # The mask above guarantees the columns that land in the next batch block's
    # padding zone are exact zeros, so conv2's causal reads stay correct.
    h1g_ref[:, 0:pad] = jnp.zeros((Cout, pad), h1g_ref.dtype)
    h1g_ref[:, pad:pad + Tp] = h1.astype(h1g_ref.dtype)

    # ---- conv2: K accumulating matmuls over lane-shifted views of the scratch ----
    acc2 = jnp.zeros((Cout, Tp), jnp.float32)
    for k in range(K):  # K is small & static: cheap unroll
        off = k * dilation
        acc2 += jnp.dot(w2_ref[k], h1g_ref[:, off:off + Tp],
                        preferred_element_type=jnp.float32)
    h2 = jnp.maximum(acc2 + b2_ref[...], 0.0)
    # dropout2: identity (inference / eval mode)

    # ---- residual 1x1 conv (computed last to bound live f32 temps) ---------------
    # The un-padded input is exactly the last tap's row block of the im2col slab.
    xres = xcol_ref[(K - 1) * Cin:K * Cin, :]
    res = jnp.dot(wds_ref[...], xres, preferred_element_type=jnp.float32) + bds_ref[...]

    out_ref[...] = jnp.maximum(h2 + res, 0.0).astype(out_ref.dtype)


def temporal_block(x, w1, b1, w2, b2, wds, bds, *, kernel_size, dilation, padding):
    """x: (B, Cin, L) float32 (PyTorch NCL). Weights in PyTorch layout:
       w1: (Cout, Cin, K), w2: (Cout, Cout, K), wds: (Cout, Cin, 1)."""
    B, Cin, L = x.shape
    Cout = w1.shape[0]
    K = kernel_size
    pad = padding
    assert padding == (K - 1) * dilation, "residual add requires causal TCN padding"

    Lp = L + pad                       # per-batch causally padded length
    T = B * Lp                         # batch flattened onto the time/lane axis
    Tp = _round_up(max(T, 128), 128)   # lane-dense width (multiple of 128)

    # Global padded input Xg: (Cin, Tp + pad); per batch block: [pad zeros | x_b], zero tail.
    xg = jnp.pad(x, ((0, 0), (0, 0), (pad, 0)))            # (B, Cin, Lp)
    xg = jnp.transpose(xg, (1, 0, 2)).reshape(Cin, T)      # (Cin, B*Lp)
    xg = jnp.pad(xg, ((0, 0), (0, Tp + pad - T)))          # (Cin, Tp + pad)

    # im2col slab for conv1: row block k = Xg shifted by k*dilation (cheap in XLA;
    # removes all misaligned tap slices and K separate tiny matmuls from the kernel).
    xcol = jnp.concatenate(
        [xg[:, k * dilation:k * dilation + Tp] for k in range(K)], axis=0
    ).astype(jnp.bfloat16)                                 # (K*Cin, Tp)

    # Kernel-friendly, bf16 (MXU-native) weight layouts.
    w1col = jnp.transpose(w1, (0, 2, 1)).reshape(Cout, K * Cin).astype(jnp.bfloat16)
    w2k = jnp.transpose(w2, (2, 0, 1)).astype(jnp.bfloat16)        # (K, Cout, Cout)
    wds2 = wds[:, :, 0].astype(jnp.bfloat16)                       # (Cout, Cin)
    b1c = b1.reshape(Cout, 1).astype(jnp.float32)
    b2c = b2.reshape(Cout, 1).astype(jnp.float32)
    bdsc = bds.reshape(Cout, 1).astype(jnp.float32)

    # Valid output columns j: inside a real batch block and not in its trailing junk.
    j = jnp.arange(Tp)
    mask = (((j % Lp) < L) & (j < T)).astype(jnp.float32).reshape(1, Tp)

    kernel = functools.partial(_temporal_block_kernel, K=K, dilation=dilation, pad=pad)

    out = pl.pallas_call(
        kernel,
        out_shape=jax.ShapeDtypeStruct((Cout, Tp), jnp.float32),
        grid_spec=pltpu.PrefetchScalarGridSpec(
            num_scalar_prefetch=0,
            grid=(1,),  # whole problem in one step: no per-grid-step pipeline overhead
            in_specs=[
                pl.BlockSpec((K * Cin, Tp), lambda i: (0, 0)),
                pl.BlockSpec((Cout, K * Cin), lambda i: (0, 0)),
                pl.BlockSpec((Cout, 1), lambda i: (0, 0)),
                pl.BlockSpec((K, Cout, Cout), lambda i: (0, 0, 0)),
                pl.BlockSpec((Cout, 1), lambda i: (0, 0)),
                pl.BlockSpec((Cout, Cin), lambda i: (0, 0)),
                pl.BlockSpec((Cout, 1), lambda i: (0, 0)),
                pl.BlockSpec((1, Tp), lambda i: (0, 0)),
            ],
            out_specs=pl.BlockSpec((Cout, Tp), lambda i: (0, 0)),
            scratch_shapes=[pltpu.VMEM((Cout, Tp + pad), jnp.bfloat16)],
        ),
        compiler_params=pltpu.CompilerParams(dimension_semantics=("arbitrary",)),
    )(xcol, w1col, b1c, w2k, b2c, wds2, bdsc, mask)

    # Extract valid columns and restore PyTorch NCL layout.
    out = out[:, :T].reshape(Cout, B, Lp)[:, :, :L]        # (Cout, B, L)
    return jnp.transpose(out, (1, 0, 2))                   # (B, Cout, L)


def _reference(x, w1, b1, w2, b2, wds, bds, *, dilation, padding):
    """Pure-JAX f32 reference mirroring the PyTorch forward (eval mode)."""
    dn = ("NCH", "OIH", "NCH")
    out = jax.lax.conv_general_dilated(x, w1, (1,), [(padding, padding)],
                                       rhs_dilation=(dilation,),
                                       dimension_numbers=dn) + b1[None, :, None]
    out = jax.nn.relu(out[:, :, :-padding])
    out = jax.lax.conv_general_dilated(out, w2, (1,), [(padding, padding)],
                                       rhs_dilation=(dilation,),
                                       dimension_numbers=dn) + b2[None, :, None]
    out = jax.nn.relu(out[:, :, :-padding])
    res = jax.lax.conv_general_dilated(x, wds, (1,), [(0, 0)],
                                       dimension_numbers=dn) + bds[None, :, None]
    return jax.nn.relu(out + res)


if __name__ == "__main__":
    B, Cin, Cout, L = 2, 4, 8, 16
    K, stride, dilation = 3, 1, 2
    padding = (K - 1) * dilation  # = 4, standard causal TCN padding

    key = jax.random.PRNGKey(0)
    k0, k1, k2, k3, k4, k5, k6 = jax.random.split(key, 7)

    x = jax.random.normal(k0, (B, Cin, L), jnp.float32)
    # deterministic synthetic parameters (PyTorch weight layouts)
    w1 = 0.1 * jax.random.normal(k1, (Cout, Cin, K), jnp.float32)
    b1 = 0.1 * jax.random.normal(k2, (Cout,), jnp.float32)
    w2 = 0.1 * jax.random.normal(k3, (Cout, Cout, K), jnp.float32)
    b2 = 0.1 * jax.random.normal(k4, (Cout,), jnp.float32)
    wds = 0.1 * jax.random.normal(k5, (Cout, Cin, 1), jnp.float32)
    bds = 0.1 * jax.random.normal(k6, (Cout,), jnp.float32)

    y = temporal_block(x, w1, b1, w2, b2, wds, bds,
                       kernel_size=K, dilation=dilation, padding=padding)
    y = jax.block_until_ready(y)

    y_ref = _reference(x, w1, b1, w2, b2, wds, bds,
                       dilation=dilation, padding=padding)
    assert y.shape == (B, Cout, L)
    # Tolerance loosened vs. the pure-f32 version: matmul operands are bf16 (f32 accumulate).
    assert jnp.allclose(y, y_ref, atol=3e-2, rtol=3e-2), "mismatch vs reference"

    # TODO(synk): dropout layers are identity here (inference/eval mode); training-mode
    # stochastic dropout would use pltpu.prng_seed / pltpu.prng_random_bits.
    print("KERNEL_OK")
</pallas_src>

<mosaic_0001>
module attributes {stable_mosaic.version = 11 : i64} {
  func.func @_temporal_block_kernel(%arg0: i32, %arg1: memref<12x128xbf16, #tpu.memory_space<vmem>>, %arg2: memref<8x12xbf16, #tpu.memory_space<vmem>>, %arg3: memref<8x1xf32, #tpu.memory_space<vmem>>, %arg4: memref<3x8x8xbf16, #tpu.memory_space<vmem>>, %arg5: memref<8x1xf32, #tpu.memory_space<vmem>>, %arg6: memref<8x4xbf16, #tpu.memory_space<vmem>>, %arg7: memref<8x1xf32, #tpu.memory_space<vmem>>, %arg8: memref<1x128xf32, #tpu.memory_space<vmem>>, %arg9: memref<8x128xf32, #tpu.memory_space<vmem>>, %arg10: memref<8x132xbf16, #tpu.memory_space<vmem>>) attributes {dimension_semantics = [#tpu.dimension_semantics<arbitrary>], iteration_bounds = array<i64: 1>, scalar_prefetch = 0 : i64, scratch_operands = 1 : i64, tpu.core_type = #tpu.core_type<tc>, window_params = [{pipeline_mode = #tpu.pipeline_mode<synchronous>, transform_indices = @transform_0, window_bounds = array<i64: 12, 128>}, {pipeline_mode = #tpu.pipeline_mode<synchronous>, transform_indices = @transform_1, window_bounds = array<i64: 8, 12>}, {pipeline_mode = #tpu.pipeline_mode<synchronous>, transform_indices = @transform_2, window_bounds = array<i64: 8, 1>}, {pipeline_mode = #tpu.pipeline_mode<synchronous>, transform_indices = @transform_3, window_bounds = array<i64: 3, 8, 8>}, {pipeline_mode = #tpu.pipeline_mode<synchronous>, transform_indices = @transform_4, window_bounds = array<i64: 8, 1>}, {pipeline_mode = #tpu.pipeline_mode<synchronous>, transform_indices = @transform_5, window_bounds = array<i64: 8, 4>}, {pipeline_mode = #tpu.pipeline_mode<synchronous>, transform_indices = @transform_6, window_bounds = array<i64: 8, 1>}, {pipeline_mode = #tpu.pipeline_mode<synchronous>, transform_indices = @transform_7, window_bounds = array<i64: 1, 128>}, {pipeline_mode = #tpu.pipeline_mode<synchronous>, transform_indices = @transform_8, window_bounds = array<i64: 8, 128>}]} {
    %c0 = arith.constant 0 : index
    %c0_0 = arith.constant 0 : index
    %0 = vector.load %arg2[%c0, %c0_0] : memref<8x12xbf16, #tpu.memory_space<vmem>>, vector<8x12xbf16>
    %c0_1 = arith.constant 0 : index
    %c0_2 = arith.constant 0 : index
    %1 = vector.load %arg1[%c0_1, %c0_2] : memref<12x128xbf16, #tpu.memory_space<vmem>>, vector<12x128xbf16>
    %cst = arith.constant dense<0.000000e+00> : vector<8x128xf32>
    %2 = tpu.matmul %0, %1, %cst {dimension_numbers = #tpu.dot_dimension_numbers<[1], [0], [0], [1], [0, 0, 1, 1], [], []>} : vector<8x12xbf16>, vector<12x128xbf16>, vector<8x128xf32> -> vector<8x128xf32>
    %c0_3 = arith.constant 0 : index
    %c0_4 = arith.constant 0 : index
    %3 = vector.load %arg3[%c0_3, %c0_4] : memref<8x1xf32, #tpu.memory_space<vmem>>, vector<8x1xf32>
    %4 = vector.broadcast %3 : vector<8x1xf32> to vector<8x128xf32>
    %5 = arith.addf %2, %4 : vector<8x128xf32>
    %cst_5 = arith.constant 0.000000e+00 : f32
    %6 = vector.broadcast %cst_5 : f32 to vector<8x128xf32>
    %7 = arith.maximumf %5, %6 : vector<8x128xf32>
    %c0_6 = arith.constant 0 : index
    %c0_7 = arith.constant 0 : index
    %8 = vector.load %arg8[%c0_6, %c0_7] : memref<1x128xf32, #tpu.memory_space<vmem>>, vector<1x128xf32>
    %9 = vector.broadcast %8 : vector<1x128xf32> to vector<8x128xf32>
    %10 = arith.mulf %7, %9 : vector<8x128xf32>
    %cst_8 = arith.constant 0.000000e+00 : bf16
    %11 = vector.broadcast %cst_8 : bf16 to vector<8x4xbf16>
    %c0_9 = arith.constant 0 : index
    %c0_10 = arith.constant 0 : index
    %12 = vector.load %arg10[%c0_9, %c0_10] : memref<8x132xbf16, #tpu.memory_space<vmem>>, vector<8x4xbf16>
    tpu.vector_store %arg10[%c0_9, %c0_10], %11 {strides = array<i32>} : memref<8x132xbf16, #tpu.memory_space<vmem>>, vector<8x4xbf16>,
    %13 = arith.truncf %10 : vector<8x128xf32> to vector<8x128xbf16>
    %c0_11 = arith.constant 0 : index
    %c4 = arith.constant 4 : index
    %14 = vector.load %arg10[%c0_11, %c4] : memref<8x132xbf16, #tpu.memory_space<vmem>>, vector<8x128xbf16>
    tpu.vector_store %arg10[%c0_11, %c4], %13 {strides = array<i32>} : memref<8x132xbf16, #tpu.memory_space<vmem>>, vector<8x128xbf16>,
    %cst_12 = arith.constant 0.000000e+00 : f32
    %15 = vector.broadcast %cst_12 : f32 to vector<8x128xf32>
    %c0_13 = arith.constant 0 : index
    %c0_14 = arith.constant 0 : index
    %c0_15 = arith.constant 0 : index
    %16 = vector.load %arg4[%c0_13, %c0_14, %c0_15] : memref<3x8x8xbf16, #tpu.memory_space<vmem>>, vector<1x8x8xbf16>
    %17 = vector.shape_cast %16 : vector<1x8x8xbf16> to vector<8x8xbf16>
    %c0_16 = arith.constant 0 : index
    %c0_17 = arith.constant 0 : index
    %18 = vector.load %arg10[%c0_16, %c0_17] : memref<8x132xbf16, #tpu.memory_space<vmem>>, vector<8x128xbf16>
    %cst_18 = arith.constant dense<0.000000e+00> : vector<8x128xf32>
    %19 = tpu.matmul %17, %18, %cst_18 {dimension_numbers = #tpu.dot_dimension_numbers<[1], [0], [0], [1], [0, 0, 1, 1], [], []>} : vector<8x8xbf16>, vector<8x128xbf16>, vector<8x128xf32> -> vector<8x128xf32>
    %20 = arith.addf %15, %19 : vector<8x128xf32>
    %c1 = arith.constant 1 : index
    %c0_19 = arith.constant 0 : index
    %c0_20 = arith.constant 0 : index
    %21 = vector.load %arg4[%c1, %c0_19, %c0_20] : memref<3x8x8xbf16, #tpu.memory_space<vmem>>, vector<1x8x8xbf16>
    %22 = vector.shape_cast %21 : vector<1x8x8xbf16> to vector<8x8xbf16>
    %c0_21 = arith.constant 0 : index
    %c2 = arith.constant 2 : index
    %23 = vector.load %arg10[%c0_21, %c2] : memref<8x132xbf16, #tpu.memory_space<vmem>>, vector<8x128xbf16>
    %cst_22 = arith.constant dense<0.000000e+00> : vector<8x128xf32>
    %24 = tpu.matmul %22, %23, %cst_22 {dimension_numbers = #tpu.dot_dimension_numbers<[1], [0], [0], [1], [0, 0, 1, 1], [], []>} : vector<8x8xbf16>, vector<8x128xbf16>, vector<8x128xf32> -> vector<8x128xf32>
    %25 = arith.addf %20, %24 : vector<8x128xf32>
    %c2_23 = arith.constant 2 : index
    %c0_24 = arith.constant 0 : index
    %c0_25 = arith.constant 0 : index
    %26 = vector.load %arg4[%c2_23, %c0_24, %c0_25] : memref<3x8x8xbf16, #tpu.memory_space<vmem>>, vector<1x8x8xbf16>
    %27 = vector.shape_cast %26 : vector<1x8x8xbf16> to vector<8x8xbf16>
    %c0_26 = arith.constant 0 : index
    %c4_27 = arith.constant 4 : index
    %28 = vector.load %arg10[%c0_26, %c4_27] : memref<8x132xbf16, #tpu.memory_space<vmem>>, vector<8x128xbf16>
    %cst_28 = arith.constant dense<0.000000e+00> : vector<8x128xf32>
    %29 = tpu.matmul %27, %28, %cst_28 {dimension_numbers = #tpu.dot_dimension_numbers<[1], [0], [0], [1], [0, 0, 1, 1], [], []>} : vector<8x8xbf16>, vector<8x128xbf16>, vector<8x128xf32> -> vector<8x128xf32>
    %30 = arith.addf %25, %29 : vector<8x128xf32>
    %c0_29 = arith.constant 0 : index
    %c0_30 = arith.constant 0 : index
    %31 = vector.load %arg5[%c0_29, %c0_30] : memref<8x1xf32, #tpu.memory_space<vmem>>, vector<8x1xf32>
    %32 = vector.broadcast %31 : vector<8x1xf32> to vector<8x128xf32>
    %33 = arith.addf %30, %32 : vector<8x128xf32>
    %cst_31 = arith.constant 0.000000e+00 : f32
    %34 = vector.broadcast %cst_31 : f32 to vector<8x128xf32>
    %35 = arith.maximumf %33, %34 : vector<8x128xf32>
    %c8 = arith.constant 8 : index
    %c0_32 = arith.constant 0 : index
    %36 = vector.load %arg1[%c8, %c0_32] : memref<12x128xbf16, #tpu.memory_space<vmem>>, vector<4x128xbf16>
    %c0_33 = arith.constant 0 : index
    %c0_34 = arith.constant 0 : index
    %37 = vector.load %arg6[%c0_33, %c0_34] : memref<8x4xbf16, #tpu.memory_space<vmem>>, vector<8x4xbf16>
    %cst_35 = arith.constant dense<0.000000e+00> : vector<8x128xf32>
    %38 = tpu.matmul %37, %36, %cst_35 {dimension_numbers = #tpu.dot_dimension_numbers<[1], [0], [0], [1], [0, 0, 1, 1], [], []>} : vector<8x4xbf16>, vector<4x128xbf16>, vector<8x128xf32> -> vector<8x128xf32>
    %c0_36 = arith.constant 0 : index
    %c0_37 = arith.constant 0 : index
    %39 = vector.load %arg7[%c0_36, %c0_37] : memref<8x1xf32, #tpu.memory_space<vmem>>, vector<8x1xf32>
    %40 = vector.broadcast %39 : vector<8x1xf32> to vector<8x128xf32>
    %41 = arith.addf %38, %40 : vector<8x128xf32>
    %42 = arith.addf %35, %41 : vector<8x128xf32>
    %cst_38 = arith.constant 0.000000e+00 : f32
    %43 = vector.broadcast %cst_38 : f32 to vector<8x128xf32>
    %44 = arith.maximumf %42, %43 : vector<8x128xf32>
    %c0_39 = arith.constant 0 : index
    %c0_40 = arith.constant 0 : index
    %45 = vector.load %arg9[%c0_39, %c0_40] : memref<8x128xf32, #tpu.memory_space<vmem>>, vector<8x128xf32>
    tpu.vector_store %arg9[%c0_39, %c0_40], %44 {strides = array<i32>} : memref<8x128xf32, #tpu.memory_space<vmem>>, vector<8x128xf32>,
    return
  }
  func.func @transform_0(%arg0: i32) -> (i32, i32) {
    %c0_i32 = arith.constant 0 : i32
    %c0_i32_0 = arith.constant 0 : i32
    %c0_i32_1 = arith.constant 0 : i32
    return %c0_i32, %c0_i32_0 : i32, i32
  }
  func.func @transform_1(%arg0: i32) -> (i32, i32) {
    %c0_i32 = arith.constant 0 : i32
    %c0_i32_0 = arith.constant 0 : i32
    %c0_i32_1 = arith.constant 0 : i32
    return %c0_i32, %c0_i32_0 : i32, i32
  }
  func.func @transform_2(%arg0: i32) -> (i32, i32) {
    %c0_i32 = arith.constant 0 : i32
    %c0_i32_0 = arith.constant 0 : i32
    %c0_i32_1 = arith.constant 0 : i32
    return %c0_i32, %c0_i32_0 : i32, i32
  }
  func.func @transform_3(%arg0: i32) -> (i32, i32, i32) {
    %c0_i32 = arith.constant 0 : i32
    %c0_i32_0 = arith.constant 0 : i32
    %c0_i32_1 = arith.constant 0 : i32
    %c0_i32_2 = arith.constant 0 : i32
    return %c0_i32, %c0_i32_0, %c0_i32_1 : i32, i32, i32
  }
  func.func @transform_4(%arg0: i32) -> (i32, i32) {
    %c0_i32 = arith.constant 0 : i32
    %c0_i32_0 = arith.constant 0 : i32
    %c0_i32_1 = arith.constant 0 : i32
    return %c0_i32, %c0_i32_0 : i32, i32
  }
  func.func @transform_5(%arg0: i32) -> (i32, i32) {
    %c0_i32 = arith.constant 0 : i32
    %c0_i32_0 = arith.constant 0 : i32
    %c0_i32_1 = arith.constant 0 : i32
    return %c0_i32, %c0_i32_0 : i32, i32
  }
  func.func @transform_6(%arg0: i32) -> (i32, i32) {
    %c0_i32 = arith.constant 0 : i32
    %c0_i32_0 = arith.constant 0 : i32
    %c0_i32_1 = arith.constant 0 : i32
    return %c0_i32, %c0_i32_0 : i32, i32
  }
  func.func @transform_7(%arg0: i32) -> (i32, i32) {
    %c0_i32 = arith.constant 0 : i32
    %c0_i32_0 = arith.constant 0 : i32
    %c0_i32_1 = arith.constant 0 : i32
    return %c0_i32, %c0_i32_0 : i32, i32
  }
  func.func @transform_8(%arg0: i32) -> (i32, i32) {
    %c0_i32 = arith.constant 0 : i32
    %c0_i32_0 = arith.constant 0 : i32
    %c0_i32_1 = arith.constant 0 : i32
    return %c0_i32, %c0_i32_0 : i32, i32
  }
}

</mosaic_0001>

<bundles_post_ra>
// kernel: tpu_custom_call.1
= control target key start
LH: loop header
LB: loop body
LE: loop exit
PB: predicated region body
PF: predicated region fallthrough
CT: control target
= control target key end

     0   :  { %vm49_vm0 = vcmask 1045504   ;;  %v453_v0 = vmov 0.0   ;;  %vm454_vm1 = vmmov 0   ;;  %vm102_vm2 = vcmask 27648   ;;  %s573_s0 = inlined_call_operand.vmem [shape: bf16[12,128], index: 0, kind: input, shape index: {}]   ;;  %s574_s1 = inlined_call_operand.vmem [shape: bf16[8,12], index: 1, kind: input, shape index: {}]   ;;  %s575_s2 = inlined_call_operand.vmem [shape: f32[8,1], index: 2, kind: input, shape index: {}]   ;;  %s576_s3 = inlined_call_operand.vmem [shape: bf16[3,8,8], index: 3, kind: input, shape index: {}]   ;;  %s577_s4 = inlined_call_operand.vmem [shape: f32[8,1], index: 4, kind: input, shape index: {}]   ;;  %s578_s5 = inlined_call_operand.vmem [shape: bf16[8,4], index: 5, kind: input, shape index: {}]   ;;  %s579_s6 = inlined_call_operand.vmem [shape: f32[8,1], index: 6, kind: input, shape index: {}]   ;;  %s580_s7 = inlined_call_operand.vmem [shape: f32[1,128], index: 7, kind: input, shape index: {}]   ;;  %s581_s8 = inlined_call_operand.hbm [shape: f32[8,128], index: 8, kind: output, shape index: {}]  }
   0x1   :  { %387 = vmatprep.subr.bf16.mxu0 %v453_v0  ;;  %v426_v1 = vld [vmem:[%s573_s0] sm:$0x3f]   ;;  %393 = vmatprep.subr.bf16.mxu1 %v453_v0 }
   0x2   :  { %389 = vmatprep.mubr.msk.bf16.mxu0 %vm454_vm1, %v453_v0  ;;  %v34_v2 = vld [vmem:[%s575_s2] sm:$0xff]  ;;  %395 = vmatprep.mubr.msk.bf16.mxu1 %vm454_vm1, %v453_v0 }
   0x3   :  { %13 = vsyncpa [#allocation4], 0  ;;  %v51_v3 = vsel %vm49_vm0, %v426_v1, 0  ;;  %v455_v4 = vmov 0   ;;  %v31_v5 = vld [vmem:[%s574_s1] sm:$0xf] }
   0x4   :  { %424 = vset.pattern.permute.xlu0 %v455_v4  ;;  %103 = vst.msk [vmem:[#allocation2] sm:$0xf] %vm102_vm2, %v455_v4  ;;  %425 = vset.pattern.permute.xlu1 %v455_v4  ;;  %vm45_vm3 = vcmask 97280   ;;  %v366_v10 = vld [vmem:[%s580_s7] ss:$0 sm:$0xff]  ;;  %s456_s1 = smov 4  }
   0x5   :  { %388 = vmatpush3.bf16.msra.mxu0 %v51_v3  ;;  %37 = vperm.xlu0 %424, %v34_v2   ;;  %vm114_vm4 = vcmask 1043488   ;;  %vm115_vm5 = vcmask 31748   ;;  %vm111_vm6 = vcmask 31744   ;;  %vm138_vm8 = vcmask 1043456   ;;  %v291_v21 = vld [vmem:[%s573_s0 + $0x4] sm:$0x3] }
   0x6   :  { %399 = vmatprep.subr.bf16.mxu0 %v453_v0  ;;  %vm116_vm7 = vmor %vm115_vm5, %vm114_vm4  ;;  %vm303_vm9 = vcmask 1041408   ;;  %vm134_vm10 = vcmask 64512   ;;  %v118_v24 = vld [vmem:[%s576_s3] sm:$0xf]  ;;  %s457_s15 = smov 124   ;;  %s458_s16 = smov 126  }
   0x7   :  { %v305_v25 = vsel %vm303_vm9, %v291_v21, 0  ;;  %v283_v26 = vld [vmem:[%s577_s4] sm:$0xff]  ;;  %vm132_vm11 = vcmask 1031168   ;;  %vm234_vm12 = vcmask 1014784   ;;  %v373_v39 = vld [vmem:[%s576_s3 + $0x8] sm:$0xf] }
   0x8   :  { %390 = vmatmul.mubr.msk.bf16.vlgmr.msra.gmra.mrb[0].mxu0 %vm45_vm3, %v31_v5  ;;  %v292_v28 = vld [vmem:[%s578_s5] sm:$0xf]  ;;  %v368_v34 = vld [vmem:[%s576_s3 + $0x4] sm:$0xf]  ;;  %s459_s3 = smov [#allocation3]  }
   0x9   :  { %401 = vmatprep.mubr.msk.bf16.mxu0 %vm454_vm1, %v453_v0  ;;  %v293_v29 = vld [vmem:[%s579_s6] sm:$0xff]  ;;  %s356_s23 = sshll.u32 %s459_s3, 4  ;;  %s357_s23 = int_to_ptr.vmem [resolvable:$true] %s356_s23 }
   0xa   :  { %s429_s24 = scalar_lea.vmem %s357_s23, 128  ;;  %p434_p1 = scmp.lt.s32.totalorder %s357_s23, %s357_s23 }
   0xb   :  { %p430_p0 = scmp.ne.s32.totalorder %s357_s23, %s429_s24  ;;  %p435_p2 = scmp.lt.s32.totalorder %s429_s24, %s429_s24 }
   0xd   :  { %p436_p3 = por %p435_p2, %p434_p1 }
   0xf   :  { %p437_p4 = pnand %p436_p3, %p430_p0 }
  0x84   :  { %v38_v6 = vpop.permute.xlu0 %37 }
  0xdb   :  { %v87_v7 = vpop.f32.mrb[0].mxu0 }
  0xdc   :  { %v88_v8 = vadd.f32 %v87_v7, %v38_v6  ;;  %v391_v9 = vpop.f32.mrb[1].mxu0 }
  0xdd   :  { %v90_v11 = vpop.f32.mrb[2].mxu0 }
  0xde   :  { %v93_v12 = vmax.f32 %v88_v8, 0.0  ;;  %v392_v13 = vpop.f32.mrb[3].mxu0 }
  0xe0   :  { %v101_v14 = vmul.f32 %v366_v10, %v93_v12 }
  0xe2   :  { %v376_v15 = vpack.c.bf16 %v101_v14, %v101_v14 }
  0xe4   :  { %108 = vrot.lane.b32.xlu0 %v376_v15, %s456_s1 }
 0x156   :  { %v109_v16 = vpop.permute.xlu0 %108 }
 0x157   :  { %v110_v17 = vrot.slane %v109_v16, 4 }
 0x159   :  { %v112_v18 = vsel %vm111_vm6, %v110_v17, %v109_v16 }
 0x15a   :  { %117 = vst.msk [vmem:[#allocation2] sm:$0xff] %vm116_vm7, %v112_v18 }
 0x161   :  { %v119_v19 = vld [vmem:[#allocation2] sm:$0xf] }
 0x162   :  { %v122_v20 = vld [vmem:[#allocation2] sm:$0xff]  ;;  %v186_v22 = vsel %vm138_vm8, %v119_v19, 0 }
 0x163   :  { %v369_v23 = vcombine.low %v122_v20, %v122_v20  ;;  %400 = vmatpush3.bf16.msra.mxu0 %v186_v22  ;;  %v370_v27 = vcombine.high %v122_v20, %v122_v20 }
 0x164   :  { %411 = vmatprep.subr.bf16.mxu0 %v453_v0 }
 0x165   :  { %230 = vrot.lane.b32.xlu0 %v369_v23, %s457_s15  ;;  %128 = vrot.lane.b32.xlu1 %v369_v23, %s458_s16 }
 0x166   :  { %402 = vmatmul.mubr.msk.bf16.vlgmr.msra.gmra.mrb[4].mxu0 %vm134_vm10, %v118_v24 }
 0x167   :  { %412 = vmatpush3.bf16.msra.mxu0 %v305_v25  ;;  %413 = vmatprep.mubr.msk.bf16.mxu0 %vm454_vm1, %v453_v0 }
 0x169   :  { %286 = vperm.xlu0 %424, %v283_v26   ;;  %130 = vrot.lane.b32.xlu1 %v370_v27, %s458_s16 }
 0x16d   :  { %232 = vrot.lane.b32.xlu1 %v370_v27, %s457_s15 }
 0x16e   :  { %414 = vmatmul.mubr.msk.bf16.vlgmr.msra.gmra.mrb[8].mxu0 %vm111_vm6, %v292_v28 }
 0x171   :  { %296 = vperm.xlu1 %425, %v293_v29  }
 0x1d7   :  { %v129_v30 = vpop.permute.xlu1 %128  ;;  %v231_v35 = vpop.permute.xlu0 %230 }
 0x1db   :  { %v131_v31 = vpop.permute.xlu1 %130 }
 0x1dc   :  { %v133_v32 = vsel %vm132_vm11, %v129_v30, %v131_v31 }
 0x1dd   :  { %v140_v33 = vsel %vm138_vm8, %v133_v32, 0 }
 0x1de   :  { %394 = vmatpush3.bf16.msra.mxu1 %v140_v33 }
 0x1df   :  { %v233_v36 = vpop.permute.xlu1 %232  ;;  %405 = vmatprep.subr.bf16.mxu1 %v453_v0 }
 0x1e0   :  { %v235_v37 = vsel %vm234_vm12, %v231_v35, %v233_v36 }
 0x1e1   :  { %v240_v38 = vsel %vm138_vm8, %v235_v37, 0  ;;  %396 = vmatmul.mubr.msk.bf16.vlgmr.msra.gmra.mrb[0].mxu1 %vm134_vm10, %v368_v34 }
 0x1e2   :  { %406 = vmatpush3.bf16.msra.mxu1 %v240_v38  ;;  %407 = vmatprep.mubr.msk.bf16.mxu1 %vm454_vm1, %v453_v0 }
 0x1e8   :  { %v287_v57 = vpop.permute.xlu0 %286 }
 0x1e9   :  { %408 = vmatmul.mubr.msk.bf16.vlgmr.msra.gmra.mrb[4].mxu1 %vm134_vm10, %v373_v39 }
 0x1f0   :  { %v297_v54 = vpop.permute.xlu1 %296 }
 0x239   :  { %v222_v40 = vpop.f32.mrb[4].mxu0 }
 0x23a   :  { %v403_v41 = vpop.f32.mrb[5].mxu0 }
 0x23b   :  { %v225_v42 = vpop.f32.mrb[6].mxu0 }
 0x23c   :  { %v404_v43 = vpop.f32.mrb[7].mxu0 }
 0x241   :  { %v341_v44 = vpop.f32.mrb[8].mxu0 }
 0x242   :  { %v415_v45 = vpop.f32.mrb[9].mxu0  ;;  %v342_v61 = vadd.f32 %v341_v44, %v297_v54 }
 0x243   :  { %v344_v46 = vpop.f32.mrb[10].mxu0 }
 0x244   :  { %v416_v47 = vpop.f32.mrb[11].mxu0 }
 0x2b4   :  { %v176_v48 = vpop.f32.mrb[0].mxu1 }
 0x2b5   :  { %v397_v49 = vpop.f32.mrb[1].mxu1  ;;  %v223_v50 = vadd.f32 %v222_v40, %v176_v48 }
 0x2b6   :  { %v179_v51 = vpop.f32.mrb[2].mxu1 }
 0x2b7   :  { %v398_v52 = vpop.f32.mrb[3].mxu1 }
 0x2bc   :  { %v276_v53 = vpop.f32.mrb[4].mxu1 }
 0x2bd   :  { %v282_v55 = vadd.f32 %v276_v53, %v223_v50  ;;  %v409_v56 = vpop.f32.mrb[5].mxu1 }
 0x2be   :  { %v279_v58 = vpop.f32.mrb[6].mxu1 }
 0x2bf   :  { %v289_v59 = vadd.f32 %v287_v57, %v282_v55  ;;  %v410_v60 = vpop.f32.mrb[7].mxu1 }
 0x2c1   :  { %v290_v62 = vmax.f32 %v289_v59, 0.0 }
 0x2c3   :  { %v347_v63 = vadd.f32 %v342_v61, %v290_v62 }
 0x2c5   :  { %v348_v0 = vmax.f32 %v347_v63, 0.0 }
 0x2c7   :  { %349 = vst [vmem:[#allocation3] sm:$0xff] %v348_v0 }
 0x2c8   :  { %440 = shalt.err (!%p437_p4)
}
 0x2c9   :  { %s441_s27 = scalar_lea.hbm %s581_s8, 128 }
 0x2ca   :  { %p442_p5 = scmp.ne.s32.totalorder %s581_s8, %s441_s27  ;;  %p445_p6 = scmp.lt.u32.totalorder %s441_s27, %s581_s8 }
 0x2cc   :  { %p447_p7 = pnand %p445_p6, %p442_p5 }
 0x2ce   :  { %450 = shalt.err (!%p447_p7)
}
 0x2cf   :  { %359 = dma.vmem_to_hbm [thread:$0]  %s357_s23, 128, %s581_s8, [#allocation4]  }
 0x2d0   :  { %451 = dma.done.wait [#allocation4], 128  }
 0x2d1   :  { %452 = vsyncadd [#allocation4], 4294967168 }
 0x2d2   :  { %363 = vsyncpa [#allocation4], 1 }

</bundles_post_ra>
